<compile_context>
chip_gen: v7x
topology: tpu7x:2x2x1
jax: 0.10.0
libtpu: 0.0.40
codegen_flags: <defaults>
</compile_context>

<pallas_src>
import functools
import math

import jax
import jax.numpy as jnp
from jax import lax
from jax.experimental import pallas as pl
from jax.experimental.pallas import tpu as pltpu


def _round_up(x, m):
    return (x + m - 1) // m * m


# ---------------------------------------------------------------------------
# Linear: y = x @ W + b   (W stored transposed vs PyTorch: [in, out])
# ---------------------------------------------------------------------------
def _linear_kernel(x_ref, w_ref, b_ref, o_ref):
    acc = jnp.dot(x_ref[...], w_ref[...], preferred_element_type=jnp.float32)
    acc = acc + b_ref[...].astype(jnp.float32)
    o_ref[...] = acc.astype(o_ref.dtype)


def linear_forward(x, w_t, b, *, tm=256, tn=256, mxu_bf16=False):
    """x: [..., K]; w_t: [K, N]; b: [N] -> [..., N]."""
    orig_shape = x.shape
    K = orig_shape[-1]
    N = w_t.shape[1]
    out_dtype = x.dtype

    x2 = x.reshape(-1, K)
    M = x2.shape[0]

    # Large M tiles; ragged M handled by padding (no hard assert).
    tm_eff = min(tm, _round_up(M, 8))
    Mp = _round_up(M, tm_eff)
    # Keep the output lane-dense; only tile N when it is large.
    if N <= 512:
        tn_eff, Np = N, N
    else:
        tn_eff = tn
        Np = _round_up(N, tn_eff)

    if Mp != M:
        x2 = jnp.pad(x2, ((0, Mp - M), (0, 0)))
    w_p = w_t if Np == N else jnp.pad(w_t, ((0, 0), (0, Np - N)))
    b_p = (b if Np == N else jnp.pad(b, (0, Np - N))).reshape(1, Np)

    if mxu_bf16:
        # v6e/v7x: bf16 operands + f32 accumulate -> ~2x MXU throughput and
        # half the HBM traffic for x and W.  Off by default for f32 parity.
        x2 = x2.astype(jnp.bfloat16)
        w_p = w_p.astype(jnp.bfloat16)

    bytes_accessed = int(Mp * K * x2.dtype.itemsize
                         + K * Np * w_p.dtype.itemsize
                         + Mp * Np * jnp.dtype(out_dtype).itemsize)

    out = pl.pallas_call(
        _linear_kernel,
        out_shape=jax.ShapeDtypeStruct((Mp, Np), out_dtype),
        grid_spec=pltpu.PrefetchScalarGridSpec(
            num_scalar_prefetch=0,
            grid=(Mp // tm_eff, Np // tn_eff),
            in_specs=[
                pl.BlockSpec((tm_eff, K), lambda i, j: (i, 0)),
                pl.BlockSpec((K, tn_eff), lambda i, j: (0, j)),
                pl.BlockSpec((1, tn_eff), lambda i, j: (0, j)),
            ],
            out_specs=pl.BlockSpec((tm_eff, tn_eff), lambda i, j: (i, j)),
        ),
        compiler_params=pltpu.CompilerParams(
            dimension_semantics=("parallel", "parallel"),
            vmem_limit_bytes=48 * 1024 * 1024),
        cost_estimate=pl.CostEstimate(
            flops=2 * Mp * K * Np, transcendentals=0,
            bytes_accessed=bytes_accessed),
    )(x2, w_p, b_p)

    out = out[:M, :N]
    return out.reshape(*orig_shape[:-1], N)
    # TODO(synk): for very large K (>= ~4096) add a K-reduction grid axis with
    # a (tm, tn) f32 VMEM accumulator (pl.when init/finalize) to bound VMEM.


# ---------------------------------------------------------------------------
# Scaled-dot-product attention (flash-style online softmax, all heads of a
# batch element per grid step).
# ---------------------------------------------------------------------------
def _mha_attn_kernel(seed_ref, q_ref, k_ref, v_ref, mask_ref, o_ref,
                     m_sc, l_sc, acc_sc, *, sm_scale, dropout_r):
    ki = pl.program_id(2)

    @pl.when(ki == 0)
    def _():
        m_sc[...] = jnp.full(m_sc.shape, -jnp.inf, dtype=jnp.float32)
        l_sc[...] = jnp.zeros(l_sc.shape, dtype=jnp.float32)
        acc_sc[...] = jnp.zeros(acc_sc.shape, dtype=jnp.float32)

    q = q_ref[0]          # [H, tq, Dh]
    k = k_ref[0]          # [H, tk, Dh]
    v = v_ref[0]          # [H, tk, Dh]

    # Head-batched scores: [H, tq, tk]
    s = jnp.einsum("hqd,hkd->hqk", q, k, preferred_element_type=jnp.float32)
    s = s * jnp.float32(sm_scale)
    # masked_fill(mask, -1e9), same constant as the PyTorch module.
    # Mask is shared across heads -> loaded once per tile, broadcast here.
    s = jnp.where(mask_ref[0][None, :, :] > 0.0, jnp.float32(-1e9), s)

    m_prev = m_sc[...]                                   # [H, tq, 1]
    m_new = jnp.maximum(m_prev, s.max(axis=-1, keepdims=True))
    alpha = jnp.exp(m_prev - m_new)
    p = jnp.exp(s - m_new)                               # [H, tq, tk]
    l_sc[...] = alpha * l_sc[...] + p.sum(axis=-1, keepdims=True)

    if dropout_r > 0.0:
        # Inverted dropout on the attention map; 1/(1-p) is folded into the
        # final normalization.  Unique PRNG stream per (b, q-tile, kv-tile).
        tile_id = ((pl.program_id(0) * pl.num_programs(1) + pl.program_id(1))
                   * pl.num_programs(2) + pl.program_id(2))
        pltpu.prng_seed(seed_ref[0] + tile_id)
        bits = pltpu.bitcast(pltpu.prng_random_bits(p.shape), jnp.uint32)
        threshold = jnp.uint32(min(int(dropout_r * (2.0 ** 32)), 2 ** 32 - 1))
        p = jnp.where(bits >= threshold, p, jnp.float32(0.0))
        # TODO(synk): mask uses the TPU PRNG, so it is statistically
        # equivalent to torch dropout but not bit-identical.

    acc_sc[...] = alpha * acc_sc[...] + jnp.einsum(
        "hqk,hkd->hqd", p, v.astype(jnp.float32),
        preferred_element_type=jnp.float32)
    m_sc[...] = m_new

    @pl.when(ki == pl.num_programs(2) - 1)
    def _():
        out = acc_sc[...] / l_sc[...]
        if dropout_r > 0.0:
            out = out * jnp.float32(1.0 / (1.0 - dropout_r))
        o_ref[...] = out[None].astype(o_ref.dtype)


def attention_forward(q, k, v, mask_f, *, dropout_r=0.0, seed=0,
                      tq_target=128, tk_target=128):
    """q: [B, H, Sq, Dh]; k, v: [B, H, Sk, Dh]; mask_f: [B, Sq, Sk] (1=masked)."""
    B, NH, Sq, Dh = q.shape
    Sk = k.shape[2]
    sm_scale = 1.0 / math.sqrt(Dh)

    # q-tile: multiple of 8 sublanes; kv-tile: full Sk when small, else 128
    # (keeps the mask / scores blocks lane-aligned).
    tq = _round_up(Sq, 8) if Sq <= tq_target else tq_target
    Sq_p = _round_up(Sq, tq)
    if Sk <= 256:
        tk, Sk_p = Sk, Sk
    else:
        tk = tk_target
        Sk_p = _round_up(Sk, tk)

    if Sq_p != Sq:
        q = jnp.pad(q, ((0, 0), (0, 0), (0, Sq_p - Sq), (0, 0)))
    if Sk_p != Sk:
        k = jnp.pad(k, ((0, 0), (0, 0), (0, Sk_p - Sk), (0, 0)))
        v = jnp.pad(v, ((0, 0), (0, 0), (0, Sk_p - Sk), (0, 0)))
    if (Sq_p != Sq) or (Sk_p != Sk):
        # Padded keys are masked out (1.0); padded query rows are discarded.
        mask_f = jnp.pad(mask_f, ((0, 0), (0, Sq_p - Sq), (0, Sk_p - Sk)),
                         constant_values=1.0)

    kernel = functools.partial(_mha_attn_kernel, sm_scale=sm_scale,
                               dropout_r=float(dropout_r))
    seed_arr = jnp.array([seed], dtype=jnp.int32)

    out = pl.pallas_call(
        kernel,
        out_shape=jax.ShapeDtypeStruct((B, NH, Sq_p, Dh), q.dtype),
        grid_spec=pltpu.PrefetchScalarGridSpec(
            num_scalar_prefetch=1,
            grid=(B, Sq_p // tq, Sk_p // tk),
            in_specs=[
                pl.BlockSpec((1, NH, tq, Dh),
                             lambda b, qi, ki, seed: (b, 0, qi, 0)),
                pl.BlockSpec((1, NH, tk, Dh),
                             lambda b, qi, ki, seed: (b, 0, ki, 0)),
                pl.BlockSpec((1, NH, tk, Dh),
                             lambda b, qi, ki, seed: (b, 0, ki, 0)),
                # mask shared by all heads of this batch element
                pl.BlockSpec((1, tq, tk),
                             lambda b, qi, ki, seed: (b, qi, ki)),
            ],
            out_specs=pl.BlockSpec((1, NH, tq, Dh),
                                   lambda b, qi, ki, seed: (b, 0, qi, 0)),
            scratch_shapes=[pltpu.VMEM((NH, tq, 1), jnp.float32),
                            pltpu.VMEM((NH, tq, 1), jnp.float32),
                            pltpu.VMEM((NH, tq, Dh), jnp.float32)],
        ),
        compiler_params=pltpu.CompilerParams(
            dimension_semantics=("parallel", "parallel", "arbitrary"),
            vmem_limit_bytes=48 * 1024 * 1024),
        cost_estimate=pl.CostEstimate(
            flops=4 * B * NH * Sq_p * Sk_p * Dh,
            transcendentals=B * NH * Sq_p * Sk_p,
            bytes_accessed=int(4 * (B * NH * (2 * Sq_p + 2 * Sk_p) * Dh
                                    + B * Sq_p * Sk_p))),
    )(seed_arr, q, k, v, mask_f)

    return out[:, :, :Sq, :]


# ---------------------------------------------------------------------------
# Full MHAtt forward
# ---------------------------------------------------------------------------
def mhatt_forward(params, v, k, q, mask=None, *, n_heads, dropout_r=0.0,
                  seed=0, mxu_bf16=False):
    """v, k, q: [B, S, H].  Weights are stored transposed ([in, out])."""
    B, Sq, H = q.shape
    Sk = k.shape[1]
    assert H % n_heads == 0
    Dh = H // n_heads

    v_p = linear_forward(v, params["wv"], params["bv"], mxu_bf16=mxu_bf16)
    k_p = linear_forward(k, params["wk"], params["bk"], mxu_bf16=mxu_bf16)
    q_p = linear_forward(q, params["wq"], params["bq"], mxu_bf16=mxu_bf16)

    def split_heads(x):
        S = x.shape[1]
        return x.reshape(B, S, n_heads, Dh).transpose(0, 2, 1, 3)

    qh, kh, vh = split_heads(q_p), split_heads(k_p), split_heads(v_p)

    if mask is None:
        mask_f = jnp.zeros((B, Sq, Sk), dtype=jnp.float32)
    else:
        m = jnp.asarray(mask)
        if m.ndim == 4:          # e.g. [B, 1, 1-or-Sq, Sk]; heads share the mask
            m = m[:, 0]
        mask_f = jnp.broadcast_to(m, (B, Sq, Sk)).astype(jnp.float32)
        # TODO(synk): per-head masks ([B, H, Sq, Sk]) are not supported.

    att = attention_forward(qh, kh, vh, mask_f, dropout_r=dropout_r, seed=seed)

    att = att.transpose(0, 2, 1, 3).reshape(B, Sq, H)
    return linear_forward(att, params["wm"], params["bm"], mxu_bf16=mxu_bf16)
    # TODO(synk): W_res is declared in the PyTorch module but never used in
    # forward(), so it is intentionally omitted.


# ---------------------------------------------------------------------------
# Pure-JAX reference
# ---------------------------------------------------------------------------
def mhatt_reference(params, v, k, q, mask, n_heads):
    B, Sq, H = q.shape
    Sk = k.shape[1]
    Dh = H // n_heads
    vp = v @ params["wv"] + params["bv"]
    kp = k @ params["wk"] + params["bk"]
    qp = q @ params["wq"] + params["bq"]

    def sh(x):
        S = x.shape[1]
        return x.reshape(B, S, n_heads, Dh).transpose(0, 2, 1, 3)

    qh, kh, vh = sh(qp), sh(kp), sh(vp)
    scores = jnp.einsum("bhqd,bhkd->bhqk", qh, kh) / math.sqrt(Dh)
    if mask is not None:
        scores = jnp.where(mask[:, None, :, :], jnp.float32(-1e9), scores)
    att = jax.nn.softmax(scores, axis=-1)
    out = jnp.einsum("bhqk,bhkd->bhqd", att, vh)
    out = out.transpose(0, 2, 1, 3).reshape(B, Sq, H)
    return out @ params["wm"] + params["bm"]


if __name__ == "__main__":
    # Small MHAtt config: batch=2, seq=8, hidden=32, heads=4 (head dim 8).
    B, Sq, Sk, H, NH = 2, 8, 8, 32, 4

    key = jax.random.PRNGKey(0)
    keys = jax.random.split(key, 11)
    q = jax.random.normal(keys[0], (B, Sq, H), dtype=jnp.float32)
    k = jax.random.normal(keys[1], (B, Sk, H), dtype=jnp.float32)
    v = jax.random.normal(keys[2], (B, Sk, H), dtype=jnp.float32)

    bound = 1.0 / math.sqrt(H)

    def mk_linear(kw, kb):
        w = jax.random.uniform(kw, (H, H), minval=-bound, maxval=bound,
                               dtype=jnp.float32)
        b = jax.random.uniform(kb, (H,), minval=-bound, maxval=bound,
                               dtype=jnp.float32)
        return w, b

    wv, bv = mk_linear(keys[3], keys[4])
    wk, bk = mk_linear(keys[5], keys[6])
    wq, bq = mk_linear(keys[7], keys[8])
    wm, bm = mk_linear(keys[9], keys[10])
    params = dict(wv=wv, bv=bv, wk=wk, bk=bk, wq=wq, bq=bq, wm=wm, bm=bm)

    # Key-padding mask (True = masked): batch 1 has its last 2 keys masked.
    key_valid = jnp.array([Sk, Sk - 2], dtype=jnp.int32)
    mask = jnp.arange(Sk)[None, None, :] >= key_valid[:, None, None]  # [B,1,Sk]
    mask = jnp.broadcast_to(mask, (B, Sq, Sk))

    # dropout_r=0.0 == eval-mode nn.Dropout (identity), matching the reference.
    out = mhatt_forward(params, v, k, q, mask, n_heads=NH, dropout_r=0.0)
    out = jax.block_until_ready(out)

    ref = mhatt_reference(params, v, k, q, mask, NH)
    assert out.shape == (B, Sq, H)
    max_err = float(jnp.max(jnp.abs(out - ref)))
    assert max_err < 1e-4, f"max abs error {max_err}"
    print("KERNEL_OK")
</pallas_src>

<mosaic_0001>
module attributes {stable_mosaic.version = 11 : i64} {
  func.func @_linear_kernel(%arg0: i32, %arg1: i32, %arg2: memref<16x32xf32, #tpu.memory_space<vmem>>, %arg3: memref<32x32xf32, #tpu.memory_space<vmem>>, %arg4: memref<1x32xf32, #tpu.memory_space<vmem>>, %arg5: memref<16x32xf32, #tpu.memory_space<vmem>>) attributes {dimension_semantics = [#tpu.dimension_semantics<parallel>, #tpu.dimension_semantics<parallel>], iteration_bounds = array<i64: 1, 1>, scalar_prefetch = 0 : i64, scratch_operands = 0 : i64, tpu.core_type = #tpu.core_type<tc>, window_params = [{transform_indices = @transform_0, window_bounds = array<i64: 16, 32>}, {transform_indices = @transform_1, window_bounds = array<i64: 32, 32>}, {transform_indices = @transform_2, window_bounds = array<i64: 1, 32>}, {transform_indices = @transform_3, window_bounds = array<i64: 16, 32>}]} {
    %c0 = arith.constant 0 : index
    %c0_0 = arith.constant 0 : index
    %0 = vector.load %arg2[%c0, %c0_0] : memref<16x32xf32, #tpu.memory_space<vmem>>, vector<16x32xf32>
    %c0_1 = arith.constant 0 : index
    %c0_2 = arith.constant 0 : index
    %1 = vector.load %arg3[%c0_1, %c0_2] : memref<32x32xf32, #tpu.memory_space<vmem>>, vector<32x32xf32>
    %cst = arith.constant dense<0.000000e+00> : vector<16x32xf32>
    %2 = tpu.matmul %0, %1, %cst {dimension_numbers = #tpu.dot_dimension_numbers<[1], [0], [0], [1], [0, 0, 1, 1], [], []>} : vector<16x32xf32>, vector<32x32xf32>, vector<16x32xf32> -> vector<16x32xf32>
    %c0_3 = arith.constant 0 : index
    %c0_4 = arith.constant 0 : index
    %3 = vector.load %arg4[%c0_3, %c0_4] : memref<1x32xf32, #tpu.memory_space<vmem>>, vector<1x32xf32>
    %4 = vector.broadcast %3 : vector<1x32xf32> to vector<16x32xf32>
    %5 = arith.addf %2, %4 : vector<16x32xf32>
    %c0_5 = arith.constant 0 : index
    %c0_6 = arith.constant 0 : index
    %6 = vector.load %arg5[%c0_5, %c0_6] : memref<16x32xf32, #tpu.memory_space<vmem>>, vector<16x32xf32>
    tpu.vector_store %arg5[%c0_5, %c0_6], %5 {strides = array<i32>} : memref<16x32xf32, #tpu.memory_space<vmem>>, vector<16x32xf32>,
    return
  }
  func.func @transform_0(%arg0: i32, %arg1: i32) -> (i32, i32) {
    %c0_i32 = arith.constant 0 : i32
    %c0_i32_0 = arith.constant 0 : i32
    return %arg0, %c0_i32 : i32, i32
  }
  func.func @transform_1(%arg0: i32, %arg1: i32) -> (i32, i32) {
    %c0_i32 = arith.constant 0 : i32
    %c0_i32_0 = arith.constant 0 : i32
    return %c0_i32, %arg1 : i32, i32
  }
  func.func @transform_2(%arg0: i32, %arg1: i32) -> (i32, i32) {
    %c0_i32 = arith.constant 0 : i32
    %c0_i32_0 = arith.constant 0 : i32
    return %c0_i32, %arg1 : i32, i32
  }
  func.func @transform_3(%arg0: i32, %arg1: i32) -> (i32, i32) {
    %c0_i32 = arith.constant 0 : i32
    return %arg0, %arg1 : i32, i32
  }
}

</mosaic_0001>

<bundles_post_ra>
// kernel: tpu_custom_call.1
= control target key start
LH: loop header
LB: loop body
LE: loop exit
PB: predicated region body
PF: predicated region fallthrough
CT: control target
= control target key end

     0   :  { %8 = vsyncpa [#allocation3], 0  ;;  %s340_s0 = inlined_call_operand.hbm [shape: f32[16,32], index: 0, kind: input, shape index: {}]   ;;  %s341_s1 = inlined_call_operand.hbm [shape: f32[32,32], index: 1, kind: input, shape index: {}]   ;;  %s342_s2 = inlined_call_operand.vmem [shape: f32[1,32], index: 2, kind: input, shape index: {}]   ;;  %s343_s3 = inlined_call_operand.hbm [shape: f32[16,32], index: 3, kind: output, shape index: {}]  }
   0x1   :  { %9 = vsyncpa [#allocation6], 0 }
   0x2   :  { %10 = vsyncpa [#allocation4], 0  ;;  %s263_s12 = smov [#allocation2]   ;;  %s191_s16 = scalar_lea.hbm %s340_s0, 256 }
   0x3   :  { %s16_s13 = sshll.u32 %s263_s12, 4  ;;  %p192_p0 = scmp.ne.s32.totalorder %s340_s0, %s191_s16  ;;  %s17_s13 = int_to_ptr.vmem [resolvable:$true] %s16_s13 }
   0x4   :  { %p195_p1 = scmp.lt.u32.totalorder %s191_s16, %s340_s0 }
   0x6   :  { %p197_p2 = pnand %p195_p1, %p192_p0 }
   0x8   :  { %200 = shalt.err (!%p197_p2)
}
   0x9   :  { %s201_s21 = scalar_lea.vmem %s17_s13, 256  ;;  %p206_p4 = scmp.lt.s32.totalorder %s17_s13, %s17_s13 }
   0xa   :  { %p202_p3 = scmp.ne.s32.totalorder %s17_s13, %s201_s21  ;;  %p207_p5 = scmp.lt.s32.totalorder %s201_s21, %s201_s21 }
   0xc   :  { %p208_p6 = por %p207_p5, %p206_p4 }
   0xe   :  { %p209_p7 = pnand %p208_p6, %p202_p3 }
  0x10   :  { %212 = shalt.err (!%p209_p7)
}
  0x11   :  { %s264_s22 = smov 128   ;;  %s265_s23 = smov 8  }
  0x12   :  { %22 = dma.hbm_to_vmem [thread:$0]  %s340_s0, 256, %s17_s13, [#allocation3], %s264_s22, %s264_s22, %s265_s23  }
  0x13   :  { %s266_s26 = smov [#allocation5]   ;;  %s213_s30 = scalar_lea.hbm %s341_s1, 512 }
  0x14   :  { %s28_s27 = sshll.u32 %s266_s26, 4  ;;  %p214_p8 = scmp.ne.s32.totalorder %s341_s1, %s213_s30  ;;  %s29_s27 = int_to_ptr.vmem [resolvable:$true] %s28_s27 }
  0x15   :  { %p217_p9 = scmp.lt.u32.totalorder %s213_s30, %s341_s1 }
  0x17   :  { %p219_p10 = pnand %p217_p9, %p214_p8 }
  0x19   :  { %222 = shalt.err (!%p219_p10)
}
  0x1a   :  { %s223_s8 = scalar_lea.vmem %s29_s27, 512  ;;  %p228_p12 = scmp.lt.s32.totalorder %s29_s27, %s29_s27 }
  0x1b   :  { %p224_p11 = scmp.ne.s32.totalorder %s29_s27, %s223_s8  ;;  %p229_p13 = scmp.lt.s32.totalorder %s223_s8, %s223_s8 }
  0x1d   :  { %p230_p0 = por %p229_p13, %p228_p12 }
  0x1f   :  { %p231_p1 = pnand %p230_p0, %p224_p11 }
  0x21   :  { %234 = shalt.err (!%p231_p1)
}
  0x22   :  { %34 = dma.hbm_to_vmem [thread:$0]  %s341_s1, 512, %s29_s27, [#allocation6], %s264_s22, %s264_s22, %s265_s23  }
  0x23   :  { %257 = dma.done.wait [#allocation3], 256  }
  0x24   :  { %258 = vsyncadd [#allocation3], 4294967040 }
  0x25   :  { %259 = dma.done.wait [#allocation6], 512  }
  0x26   :  { %260 = vsyncadd [#allocation6], 4294966784  ;;  %vm56_vm0 = vcmask 261120   ;;  %v45_v0 = vld [vmem:[#allocation5] sm:$0xff]  ;;  %v46_v1 = vld [vmem:[#allocation5 + $0x8] sm:$0xff]  ;;  %s267_s11 = smov [#allocation7]  }
  0x27   :  { %v47_v2 = vld [vmem:[#allocation5 + $0x10] sm:$0xff]  ;;  %v178_v3 = vpack.c.bf16 %v46_v1, %v45_v0  ;;  %v48_v4 = vld [vmem:[#allocation5 + $0x18] sm:$0xff]  ;;  %s145_s12 = sshll.u32 %s267_s11, 4  ;;  %s146_s12 = int_to_ptr.vmem [resolvable:$true] %s145_s12 }
  0x28   :  { %v43_v5 = vld [vmem:[#allocation2] sm:$0xff]  ;;  %v182_v6 = vpack.c.bf16 %v48_v4, %v47_v2  ;;  %v44_v7 = vld [vmem:[#allocation2 + $0x8] sm:$0xff]  ;;  %s235_s13 = scalar_lea.vmem %s146_s12, 256  ;;  %p240_p3 = scmp.lt.s32.totalorder %s146_s12, %s146_s12 }
  0x29   :  { %175 = vmatprep.mubr.msk.f32.mxu0 %vm56_vm0, %v43_v5  ;;  %179 = vmatprep.subr.bf16.mxu0 %v178_v3  ;;  %v158_v8 = vld [vmem:[%s342_s2] ss:$0 sm:$0xff]  ;;  %p236_p2 = scmp.ne.s32.totalorder %s146_s12, %s235_s13  ;;  %p241_p4 = scmp.lt.s32.totalorder %s235_s13, %s235_s13 }
  0x2a   :  { %181 = vmatpush3.bf16.msra.mxu0 %v178_v3 }
  0x2b   :  { %183 = vmatprep.subr.bf16.mxu0 %v182_v6  ;;  %p242_p5 = por %p241_p4, %p240_p3 }
  0x2d   :  { %p243_p6 = pnand %p242_p5, %p236_p2 }
  0x2e   :  { %185 = vmatpush3.bf16.msra.mxu0 %v182_v6 }
  0x31   :  { %176 = vmatmul.mubr.msk.f32.vlgmr.msra.gmra.mrb[0].mxu0 %vm56_vm0, %v44_v7 }
 0x104   :  { %v177_v9 = vpop.f32.mrb[0].mxu0 }
 0x105   :  { %v135_v10 = vadd.f32 %v177_v9, %v158_v8  ;;  %v129_v11 = vpop.f32.mrb[1].mxu0 }
 0x106   :  { %v130_v12 = vadd.f32 %v158_v8, %v129_v11 }
 0x107   :  { %139 = vst.msk [vmem:[#allocation7 + $0x8] sm:$0xff] %vm56_vm0, %v135_v10 }
 0x108   :  { %138 = vst.msk [vmem:[#allocation7] sm:$0xff] %vm56_vm0, %v130_v12 }
 0x109   :  { %246 = shalt.err (!%p243_p6)
}
 0x10a   :  { %s247_s15 = scalar_lea.hbm %s343_s3, 256 }
 0x10b   :  { %p248_p7 = scmp.ne.s32.totalorder %s343_s3, %s247_s15  ;;  %p251_p8 = scmp.lt.u32.totalorder %s247_s15, %s343_s3 }
 0x10d   :  { %p253_p9 = pnand %p251_p8, %p248_p7 }
 0x10f   :  { %256 = shalt.err (!%p253_p9)
}
 0x110   :  { %151 = dma.vmem_to_hbm [thread:$0]  %s146_s12, 256, %s343_s3, [#allocation4], %s264_s22, %s264_s22, %s265_s23  }
 0x111   :  { %261 = dma.done.wait [#allocation4], 256  }
 0x112   :  { %262 = vsyncadd [#allocation4], 4294967040 }
 0x113   :  { %155 = vsyncpa [#allocation3], 1 }
 0x114   :  { %156 = vsyncpa [#allocation6], 1 }
 0x115   :  { %157 = vsyncpa [#allocation4], 1 }

</bundles_post_ra>
